<compile_context>
chip_gen: v6e
topology: v6e:2x2x1
jax: 0.10.0
libtpu: 0.0.40
codegen_flags: <defaults>
</compile_context>

<pallas_src>
import jax
import jax.numpy as jnp
from jax.experimental import pallas as pl
from jax.experimental.pallas import tpu as pltpu


def _round_up(x, m):
    return ((x + m - 1) // m) * m


def _vmem_capacity_bytes():
    try:
        return int(pltpu.get_tpu_info().vmem_capacity_bytes)
    except Exception:
        return 64 * 1024 * 1024  # conservative fallback (v7x-sized)


def _choose_td(d, tile_d, want_multi):
    """Pick the column tile (multiple of 128) and padded width for a feature dim d."""
    d128 = _round_up(max(int(d), 1), 128)
    td_max = max(128, min((int(tile_d) // 128) * 128, d128))
    for td in range(td_max, 0, -128):
        d_pad = _round_up(d128, td)
        tiles = d_pad // td
        waste_ok = (d_pad - d128) * 8 <= d128                 # <= 12.5% padded columns
        multi_ok = (not want_multi) or d128 < 256 or tiles >= 2
        if waste_ok and multi_ok:
            return td, d_pad
    return 128, d128   # unreachable: td=128 always satisfies both conditions


def _make_kernel(num_graphs, col_lo, col_cnt, num_fields):
    def kernel(ids_ref, *refs):
        x_refs = refs[:num_fields]
        o_refs = refs[num_fields:]
        j = pl.program_id(0)                    # column tile (spans all fused fields)
        i = pl.program_id(1)                    # node block (reduction, innermost)
        ids = ids_ref[...]                      # (1, tn) int32
        tn = ids.shape[-1]
        graph_iota = jax.lax.broadcasted_iota(jnp.int32, (num_graphs, tn), 0)

        for f in range(num_fields):
            lo, cnt = col_lo[f], col_cnt[f]

            @pl.when(jnp.logical_and(j >= lo, j < lo + cnt))
            def _(f=f):
                x = x_refs[f][...]                              # (tn, td_f), native dtype
                # one_hot[g, n] = 1 iff batch[n] == g, built already transposed (no XLU).
                one_hot = (ids == graph_iota).astype(x.dtype)   # (G, tn)
                o = o_refs[f]

                @pl.when(i == 0)
                def _():
                    o[...] = jnp.zeros_like(o)

                # (G, tn) @ (tn, td) -> (G, td), accumulated in f32 on the MXU.
                o[...] += jnp.dot(one_hot, x, preferred_element_type=jnp.float32)

    return kernel


def _segment_sum_fused(fields, batch, num_graphs, *, tile_n=None, tile_d=512):
    """Per-graph sums of each [N, D_f] array in `fields` according to batch[N].

    One fused pallas_call; returns a list of float32 [num_graphs, D_f] arrays.
    """
    batch = jnp.asarray(batch).reshape(-1).astype(jnp.int32)
    num_graphs = int(num_graphs)
    num_fields = len(fields)
    N = fields[0].shape[0]

    # Keep MXU-friendly dtypes; anything else is upcast once. Accumulation is always f32.
    fields = [f if f.dtype in (jnp.float32, jnp.bfloat16) else f.astype(jnp.float32)
              for f in fields]
    itemsizes = [f.dtype.itemsize for f in fields]
    dims = [f.shape[1] for f in fields]

    # ---- per-field column tiles (lane-dense, multiple of 128) -------------------------
    tds, d_pads = [], []
    for d in dims:
        td, d_pad = _choose_td(d, tile_d, want_multi=True)
        tds.append(td)
        d_pads.append(d_pad)
    col_cnt = [dp // td for dp, td in zip(d_pads, tds)]
    col_lo = [0]
    for c in col_cnt[:-1]:
        col_lo.append(col_lo[-1] + c)
    num_cols = sum(col_cnt)

    # ---- node tile: as large as this generation's VMEM allows -------------------------
    vmem_cap = _vmem_capacity_bytes()
    vmem_limit = int(min(vmem_cap * 3 // 4, 96 * 1024 * 1024))
    fixed = sum(2 * num_graphs * td * 4 for td in tds) + (2 << 20)    # out bufs + slack
    per_row = sum(2 * td * isz for td, isz in zip(tds, itemsizes))    # 2x-buffered feats
    per_row += 2 * 4                                                  # ids stream
    per_row += 8 * num_graphs                                         # one-hot/iota temps
    budget = max(vmem_limit - fixed, per_row * 8)
    if tile_n is None:
        tile_n = 4096 if all(isz == 2 for isz in itemsizes) else 2048
    tn = max(8, min(_round_up(N, 8), _round_up(int(tile_n), 8), 8192))
    while tn > 8 and per_row * tn > budget:
        tn = max(8, _round_up(tn // 2, 8))
    n_pad = _round_up(N, tn)
    num_blocks = n_pad // tn
    vmem_limit = int(min(max(vmem_limit, fixed + per_row * tn), vmem_cap))

    # ---- pad: extra rows get batch id == num_graphs (zero one-hot column -> dropped) ---
    ids = jnp.pad(batch, (0, n_pad - N), constant_values=num_graphs)
    ids = ids.reshape(num_blocks, 1, tn)
    xs = [jnp.pad(f, ((0, n_pad - N), (0, dp - d)))
          for f, dp, d in zip(fields, d_pads, dims)]

    # ---- BlockSpecs --------------------------------------------------------------------
    ids_spec = pl.BlockSpec((None, 1, tn), lambda j, i: (i, 0, 0))

    def field_in_spec(td, lo, cnt):
        # While a field is inactive, clamp its index to a constant block so nothing extra
        # is streamed: the first field parks on its last-fetched tile, later fields
        # pre-stage their (0, 0) tile (which they need first anyway).
        idle = (num_blocks - 1, cnt - 1) if lo == 0 else (0, 0)

        def imap(j, i):
            act = jnp.logical_and(j >= lo, j < lo + cnt)
            return (jnp.where(act, i, idle[0]), jnp.where(act, j - lo, idle[1]))

        return pl.BlockSpec((tn, td), imap)

    trash = 1 if num_fields > 1 else 0          # extra sliced-off output tile per field

    def field_out_spec(td, lo, cnt):
        sink = cnt if trash else cnt - 1        # inactive steps park on the trash tile

        def omap(j, i):
            act = jnp.logical_and(j >= lo, j < lo + cnt)
            return (0, jnp.where(act, j - lo, sink))

        return pl.BlockSpec((num_graphs, td), omap)

    in_specs = [ids_spec] + [field_in_spec(td, lo, cnt)
                             for td, lo, cnt in zip(tds, col_lo, col_cnt)]
    out_specs = tuple(field_out_spec(td, lo, cnt)
                      for td, lo, cnt in zip(tds, col_lo, col_cnt))
    out_shape = tuple(jax.ShapeDtypeStruct((num_graphs, (cnt + trash) * td), jnp.float32)
                      for td, cnt in zip(tds, col_cnt))

    kernel = _make_kernel(num_graphs, col_lo, col_cnt, num_fields)

    feat_bytes = sum(n_pad * dp * isz for dp, isz in zip(d_pads, itemsizes))
    out_bytes = sum(num_graphs * (cnt + trash) * td * 4 for td, cnt in zip(tds, col_cnt))

    outs = pl.pallas_call(
        kernel,
        out_shape=out_shape,
        grid=(num_cols, num_blocks),            # (feature tiles [parallel], node reduction)
        in_specs=in_specs,
        out_specs=out_specs,
        compiler_params=pltpu.CompilerParams(
            dimension_semantics=("parallel", "arbitrary"),
            vmem_limit_bytes=vmem_limit,
        ),
        cost_estimate=pl.CostEstimate(
            flops=2 * n_pad * num_graphs * sum(d_pads),
            transcendentals=0,
            bytes_accessed=feat_bytes + n_pad * 4 + out_bytes,
        ),
    )(ids, *xs)
    return [o[:, :d] for o, d in zip(outs, dims)]


def nodewise_reduce(node_feat, batch, num_graphs, residual=None, *,
                    tile_n=None, tile_d=512):
    """Pallas equivalent of NodewiseReduce.forward.

    node_feat: [N, F]   (data[self.field])
    batch:     [N] int  graph index per node (AtomicDataDict.BATCH_KEY)
    residual:  [N, Fr]  optional (data[self.residual_field]); the torch module concatenates
               it before scattering -- here both fields are segment-summed by ONE fused
               pallas_call (no [N, F+Fr] HBM temp) and only the tiny [G, *] results are
               concatenated.
    returns:   [num_graphs, F(+Fr)] per-graph sums (accumulated in f32 in-kernel, cast back
               to each field's dtype).
    """
    fields = [node_feat] if residual is None else [node_feat, residual]
    sums = _segment_sum_fused(fields, batch, num_graphs, tile_n=tile_n, tile_d=tile_d)
    sums = [s.astype(f.dtype) for s, f in zip(sums, fields)]
    return sums[0] if len(sums) == 1 else jnp.concatenate(sums, axis=-1)


if __name__ == "__main__":
    key = jax.random.PRNGKey(0)
    k1, k2, k3, k4 = jax.random.split(key, 4)

    # Test 1: mirrors the module's forward with a residual field -> fused path with two
    # column tiles total (exercises the clamped index maps + trash output tiles).
    N, F, Fr, G = 16, 32, 32, 2
    node_feat = jax.random.normal(k1, (N, F), dtype=jnp.float32)
    residual = jax.random.normal(k2, (N, Fr), dtype=jnp.float32)
    batch = jnp.concatenate([jnp.zeros((9,), jnp.int32), jnp.ones((7,), jnp.int32)])
    out = jax.block_until_ready(nodewise_reduce(node_feat, batch, G, residual=residual))
    ref = jax.ops.segment_sum(jnp.concatenate([node_feat, residual], axis=-1), batch,
                              num_segments=G)
    assert out.shape == (G, F + Fr)
    assert jnp.allclose(out, ref, atol=1e-5, rtol=1e-5)

    # Test 2: no residual; ragged N (dropped pad ids), non-128 feature dim (lane padding),
    # and >=2 parallel column tiles from the td-capping rule (D128=256 -> td=128 x2).
    N2, F2, G2 = 100, 200, 3
    x2 = jax.random.normal(k3, (N2, F2), dtype=jnp.float32)
    batch2 = jax.random.randint(k1, (N2,), 0, G2, dtype=jnp.int32)
    out2 = jax.block_until_ready(nodewise_reduce(x2, batch2, G2))
    ref2 = jax.ops.segment_sum(x2, batch2, num_segments=G2)
    assert out2.shape == (G2, F2)
    assert jnp.allclose(out2, ref2, atol=1e-5, rtol=1e-5)

    # Test 3: bf16 features + residual with several node blocks (tile_n=64) -> exercises
    # multi-block accumulation, pad-row dropping and the f32-accumulate/bf16-output path.
    N3, F3, Fr3, G3 = 300, 96, 64, 5
    x3 = jax.random.normal(k4, (N3, F3), dtype=jnp.bfloat16)
    r3 = jax.random.normal(k2, (N3, Fr3), dtype=jnp.bfloat16)
    batch3 = jax.random.randint(k3, (N3,), 0, G3, dtype=jnp.int32)
    out3 = jax.block_until_ready(
        nodewise_reduce(x3, batch3, G3, residual=r3, tile_n=64))
    ref3 = jax.ops.segment_sum(
        jnp.concatenate([x3, r3], axis=-1).astype(jnp.float32), batch3, num_segments=G3)
    assert out3.shape == (G3, F3 + Fr3)
    assert jnp.allclose(out3.astype(jnp.float32), ref3, atol=0.5, rtol=0.05)

    print("KERNEL_OK")
</pallas_src>

<mosaic_0001>
module attributes {stable_mosaic.version = 11 : i64} {
  func.func @kernel(%arg0: i32, %arg1: i32, %arg2: memref<1x1x16xi32, #tpu.memory_space<vmem>>, %arg3: memref<16x128xf32, #tpu.memory_space<vmem>>, %arg4: memref<16x128xf32, #tpu.memory_space<vmem>>, %arg5: memref<2x128xf32, #tpu.memory_space<vmem>>, %arg6: memref<2x128xf32, #tpu.memory_space<vmem>>) attributes {dimension_semantics = [#tpu.dimension_semantics<parallel>, #tpu.dimension_semantics<arbitrary>], iteration_bounds = array<i64: 2, 1>, scalar_prefetch = 0 : i64, scratch_operands = 0 : i64, tpu.core_type = #tpu.core_type<tc>, window_params = [{transform_indices = @transform_0, window_bounds = array<i64: 1, 1, 16>}, {transform_indices = @transform_1, window_bounds = array<i64: 16, 128>}, {transform_indices = @transform_2, window_bounds = array<i64: 16, 128>}, {transform_indices = @transform_3, window_bounds = array<i64: 2, 128>}, {transform_indices = @transform_4, window_bounds = array<i64: 2, 128>}]} {
    %c0 = arith.constant 0 : index
    %c0_0 = arith.constant 0 : index
    %c0_1 = arith.constant 0 : index
    %0 = vector.load %arg2[%c0, %c0_0, %c0_1] : memref<1x1x16xi32, #tpu.memory_space<vmem>>, vector<1x1x16xi32>
    %1 = vector.shape_cast %0 : vector<1x1x16xi32> to vector<1x16xi32>
    %2 = tpu.iota {dimensions = array<i32: 0>} : vector<2x16xi32>
    %c0_i32 = arith.constant 0 : i32
    %3 = arith.cmpi sge, %arg0, %c0_i32 : i32
    %c1_i32 = arith.constant 1 : i32
    %4 = arith.cmpi slt, %arg0, %c1_i32 : i32
    %5 = arith.andi %3, %4 : i1
    %6 = arith.extui %5 : i1 to i32
    %c0_i32_2 = arith.constant 0 : i32
    %7 = arith.cmpi ne, %6, %c0_i32_2 : i32
    scf.if %7 {
      %c0_5 = arith.constant 0 : index
      %c0_6 = arith.constant 0 : index
      %13 = vector.load %arg3[%c0_5, %c0_6] : memref<16x128xf32, #tpu.memory_space<vmem>>, vector<16x128xf32>
      %14 = vector.broadcast %1 : vector<1x16xi32> to vector<2x16xi32>
      %15 = arith.cmpi eq, %14, %2 : vector<2x16xi32>
      %16 = arith.extui %15 : vector<2x16xi1> to vector<2x16xi32>
      %17 = arith.sitofp %16 : vector<2x16xi32> to vector<2x16xf32>
      %c0_i32_7 = arith.constant 0 : i32
      %18 = arith.cmpi eq, %arg1, %c0_i32_7 : i32
      %19 = arith.extui %18 : i1 to i32
      %c0_i32_8 = arith.constant 0 : i32
      %20 = arith.cmpi ne, %19, %c0_i32_8 : i32
      scf.if %20 {
        %cst_13 = arith.constant 0.000000e+00 : f32
        %25 = vector.broadcast %cst_13 : f32 to vector<2x128xf32>
        %c0_14 = arith.constant 0 : index
        %c0_15 = arith.constant 0 : index
        %26 = vector.load %arg5[%c0_14, %c0_15] : memref<2x128xf32, #tpu.memory_space<vmem>>, vector<2x128xf32>
        tpu.vector_store %arg5[%c0_14, %c0_15], %25 {strides = array<i32>} : memref<2x128xf32, #tpu.memory_space<vmem>>, vector<2x128xf32>,
      } else {
      }
      %c0_9 = arith.constant 0 : index
      %c0_10 = arith.constant 0 : index
      %21 = vector.load %arg5[%c0_9, %c0_10] : memref<2x128xf32, #tpu.memory_space<vmem>>, vector<2x128xf32>
      %cst = arith.constant dense<0.000000e+00> : vector<2x128xf32>
      %22 = tpu.matmul %17, %13, %cst {dimension_numbers = #tpu.dot_dimension_numbers<[1], [0], [0], [1], [0, 0, 1, 1], [], []>} : vector<2x16xf32>, vector<16x128xf32>, vector<2x128xf32> -> vector<2x128xf32>
      %23 = arith.addf %21, %22 : vector<2x128xf32>
      %c0_11 = arith.constant 0 : index
      %c0_12 = arith.constant 0 : index
      %24 = vector.load %arg5[%c0_11, %c0_12] : memref<2x128xf32, #tpu.memory_space<vmem>>, vector<2x128xf32>
      tpu.vector_store %arg5[%c0_11, %c0_12], %23 {strides = array<i32>} : memref<2x128xf32, #tpu.memory_space<vmem>>, vector<2x128xf32>,
    } else {
    }
    %c1_i32_3 = arith.constant 1 : i32
    %8 = arith.cmpi sge, %arg0, %c1_i32_3 : i32
    %c2_i32 = arith.constant 2 : i32
    %9 = arith.cmpi slt, %arg0, %c2_i32 : i32
    %10 = arith.andi %8, %9 : i1
    %11 = arith.extui %10 : i1 to i32
    %c0_i32_4 = arith.constant 0 : i32
    %12 = arith.cmpi ne, %11, %c0_i32_4 : i32
    scf.if %12 {
      %c0_5 = arith.constant 0 : index
      %c0_6 = arith.constant 0 : index
      %13 = vector.load %arg4[%c0_5, %c0_6] : memref<16x128xf32, #tpu.memory_space<vmem>>, vector<16x128xf32>
      %14 = vector.broadcast %1 : vector<1x16xi32> to vector<2x16xi32>
      %15 = arith.cmpi eq, %14, %2 : vector<2x16xi32>
      %16 = arith.extui %15 : vector<2x16xi1> to vector<2x16xi32>
      %17 = arith.sitofp %16 : vector<2x16xi32> to vector<2x16xf32>
      %c0_i32_7 = arith.constant 0 : i32
      %18 = arith.cmpi eq, %arg1, %c0_i32_7 : i32
      %19 = arith.extui %18 : i1 to i32
      %c0_i32_8 = arith.constant 0 : i32
      %20 = arith.cmpi ne, %19, %c0_i32_8 : i32
      scf.if %20 {
        %cst_13 = arith.constant 0.000000e+00 : f32
        %25 = vector.broadcast %cst_13 : f32 to vector<2x128xf32>
        %c0_14 = arith.constant 0 : index
        %c0_15 = arith.constant 0 : index
        %26 = vector.load %arg6[%c0_14, %c0_15] : memref<2x128xf32, #tpu.memory_space<vmem>>, vector<2x128xf32>
        tpu.vector_store %arg6[%c0_14, %c0_15], %25 {strides = array<i32>} : memref<2x128xf32, #tpu.memory_space<vmem>>, vector<2x128xf32>,
      } else {
      }
      %c0_9 = arith.constant 0 : index
      %c0_10 = arith.constant 0 : index
      %21 = vector.load %arg6[%c0_9, %c0_10] : memref<2x128xf32, #tpu.memory_space<vmem>>, vector<2x128xf32>
      %cst = arith.constant dense<0.000000e+00> : vector<2x128xf32>
      %22 = tpu.matmul %17, %13, %cst {dimension_numbers = #tpu.dot_dimension_numbers<[1], [0], [0], [1], [0, 0, 1, 1], [], []>} : vector<2x16xf32>, vector<16x128xf32>, vector<2x128xf32> -> vector<2x128xf32>
      %23 = arith.addf %21, %22 : vector<2x128xf32>
      %c0_11 = arith.constant 0 : index
      %c0_12 = arith.constant 0 : index
      %24 = vector.load %arg6[%c0_11, %c0_12] : memref<2x128xf32, #tpu.memory_space<vmem>>, vector<2x128xf32>
      tpu.vector_store %arg6[%c0_11, %c0_12], %23 {strides = array<i32>} : memref<2x128xf32, #tpu.memory_space<vmem>>, vector<2x128xf32>,
    } else {
    }
    return
  }
  func.func @transform_0(%arg0: i32, %arg1: i32) -> (i32, i32, i32) {
    %c0_i32 = arith.constant 0 : i32
    %c0_i32_0 = arith.constant 0 : i32
    %c0_i32_1 = arith.constant 0 : i32
    return %arg1, %c0_i32, %c0_i32_0 : i32, i32, i32
  }
  func.func @transform_1(%arg0: i32, %arg1: i32) -> (i32, i32) {
    %c0_i32 = arith.constant 0 : i32
    %0 = arith.cmpi sge, %arg0, %c0_i32 : i32
    %c1_i32 = arith.constant 1 : i32
    %1 = arith.cmpi slt, %arg0, %c1_i32 : i32
    %2 = arith.andi %0, %1 : i1
    %c0_i32_0 = arith.constant 0 : i32
    %3 = arith.select %2, %arg1, %c0_i32_0 : i32
    %c0_i32_1 = arith.constant 0 : i32
    %4 = arith.subi %arg0, %c0_i32_1 : i32
    %c0_i32_2 = arith.constant 0 : i32
    %5 = arith.select %2, %4, %c0_i32_2 : i32
    %c0_i32_3 = arith.constant 0 : i32
    return %3, %5 : i32, i32
  }
  func.func @transform_2(%arg0: i32, %arg1: i32) -> (i32, i32) {
    %c1_i32 = arith.constant 1 : i32
    %0 = arith.cmpi sge, %arg0, %c1_i32 : i32
    %c2_i32 = arith.constant 2 : i32
    %1 = arith.cmpi slt, %arg0, %c2_i32 : i32
    %2 = arith.andi %0, %1 : i1
    %c0_i32 = arith.constant 0 : i32
    %3 = arith.select %2, %arg1, %c0_i32 : i32
    %c1_i32_0 = arith.constant 1 : i32
    %4 = arith.subi %arg0, %c1_i32_0 : i32
    %c0_i32_1 = arith.constant 0 : i32
    %5 = arith.select %2, %4, %c0_i32_1 : i32
    %c0_i32_2 = arith.constant 0 : i32
    return %3, %5 : i32, i32
  }
  func.func @transform_3(%arg0: i32, %arg1: i32) -> (i32, i32) {
    %c0_i32 = arith.constant 0 : i32
    %0 = arith.cmpi sge, %arg0, %c0_i32 : i32
    %c1_i32 = arith.constant 1 : i32
    %1 = arith.cmpi slt, %arg0, %c1_i32 : i32
    %2 = arith.andi %0, %1 : i1
    %c0_i32_0 = arith.constant 0 : i32
    %3 = arith.subi %arg0, %c0_i32_0 : i32
    %c1_i32_1 = arith.constant 1 : i32
    %4 = arith.select %2, %3, %c1_i32_1 : i32
    %c0_i32_2 = arith.constant 0 : i32
    %c0_i32_3 = arith.constant 0 : i32
    return %c0_i32_2, %4 : i32, i32
  }
  func.func @transform_4(%arg0: i32, %arg1: i32) -> (i32, i32) {
    %c1_i32 = arith.constant 1 : i32
    %0 = arith.cmpi sge, %arg0, %c1_i32 : i32
    %c2_i32 = arith.constant 2 : i32
    %1 = arith.cmpi slt, %arg0, %c2_i32 : i32
    %2 = arith.andi %0, %1 : i1
    %c1_i32_0 = arith.constant 1 : i32
    %3 = arith.subi %arg0, %c1_i32_0 : i32
    %c1_i32_1 = arith.constant 1 : i32
    %4 = arith.select %2, %3, %c1_i32_1 : i32
    %c0_i32 = arith.constant 0 : i32
    %c0_i32_2 = arith.constant 0 : i32
    return %c0_i32, %4 : i32, i32
  }
}

</mosaic_0001>

<bundles_post_ra>
// kernel: tpu_custom_call.1
= control target key start
LH: loop header
LB: loop body
LE: loop exit
PB: predicated region body
PF: predicated region fallthrough
CT: control target
= control target key end

     0   :  { %s1764_s0 = inlined_call_operand.hbm [shape: s32[1,1,16], index: 0, kind: input, shape index: {}]   ;;  %s1765_s1 = inlined_call_operand.hbm [shape: f32[16,128], index: 1, kind: input, shape index: {}]   ;;  %s1766_s2 = inlined_call_operand.hbm [shape: f32[16,128], index: 2, kind: input, shape index: {}]   ;;  %s1767_s3 = inlined_call_operand.hbm [shape: f32[2,256], index: 3, kind: output, shape index: {0}]   ;;  %s1768_s4 = inlined_call_operand.hbm [shape: f32[2,256], index: 4, kind: output, shape index: {1}]  }
   0x1   :  { %1800 = sst [smem:[#allocation30_spill]] %s1764_s0 }
   0x2   :  { %1801 = sst [smem:[#allocation31_spill]] %s1765_s1 }
   0x3   :  { %1802 = sst [smem:[#allocation32_spill]] %s1766_s2 }
   0x4   :  { %1803 = sst [smem:[#allocation33_spill]] %s1767_s3 }
   0x5   :  { %1804 = sst [smem:[#allocation34_spill]] %s1768_s4 }
   0x6   :  { %10 = vsyncpa [#allocation3], 0 }
   0x7   :  { %11 = vsyncpa [#allocation6], 0 }
   0x8   :  { %13 = vsyncpa [#allocation6 + $0x1], 0 }
   0x9   :  { %14 = vsyncpa [#allocation4], 0 }
   0xa   :  { %16 = vsyncpa [#allocation4 + $0x1], 0 }
   0xb   :  { %17 = vsyncpa [#allocation10], 0 }
   0xc   :  { %19 = vsyncpa [#allocation10 + $0x1], 0  ;;  %s1323_s15 = smov 0   ;;  %s1325_s16 = smov 0  }
   0xd   :  { %s1327_s17 = smov 0   ;;  %s1329_s18 = smov 0  }
   0xe   :  { %s1331_s19 = smov 0   ;;  %s1333_s20 = smov 0  }
   0xf   :  { %s1335_s21 = smov 0   ;;  %s1337_s22 = smov 0  }
  0x10   :  { %s1339_s23 = smov 0   ;;  %s1341_s24 = smov 0  }
  0x11   :  { %s1343_s25 = smov 0   ;;  %s1345_s26 = smov 0  }
  0x12   :  { %s1347_s27 = smov 0   ;;  %s1349_s28 = smov 0  }
  0x13   :  { %s1351_s29 = smov 0  }
  0x14 LB: > { %1805 = sst [smem:[#allocation16_spill]] %s1229_s15  ;;  %s37_s30 = sadd.s32 1, %s1281_s28  ;;  %s1285_s29 = sphi %s1351_s29, %s25_s29   ;;  %s1281_s28 = sphi %s1349_s28, %s1878_s28   ;;  %s1277_s27 = sphi %s1347_s27, %s1877_s27   ;;  %s1273_s26 = sphi %s1345_s26, %s1890_s26   ;;  %s1269_s25 = sphi %s1343_s25, %s1889_s25   ;;  %s1265_s24 = sphi %s1341_s24, %s1888_s24   ;;  %s1261_s23 = sphi %s1339_s23, %s1887_s23   ;;  %s1257_s22 = sphi %s1337_s22, %s1886_s22   ;;  %s1253_s21 = sphi %s1335_s21, %s1885_s21   ;;  %s1249_s20 = sphi %s1333_s20, %s1873_s20   ;;  %s1245_s19 = sphi %s1331_s19, %s1884_s19   ;;  %s1241_s18 = sphi %s1329_s18, %s1883_s18   ;;  %s1237_s17 = sphi %s1327_s17, %s1882_s17   ;;  %s1233_s16 = sphi %s1325_s16, %s1881_s16   ;;  %s1229_s15 = sphi %s1323_s15, %s1880_s15  }
  0x15   : > { %1806 = sst [smem:[#allocation17_spill]] %s1241_s18  ;;  %p39_p0 = scmp.ge.s32.totalorder %s37_s30, 2 }
  0x16   : > { %1807 = sst [smem:[#allocation18_spill]] %s1249_s20  ;;  %p68_p1 = scmp.lt.s32.totalorder %s1281_s28, 1 }
  0x17   : > { %1808 = sst [smem:[#allocation19_spill]] %s1273_s26  ;;  %s84_s5 = sadd.s32 1, %s1273_s26 }
  0x18   : > { %1809 = sst [smem:[#allocation20_spill]] %s1277_s27  ;;  %p91_p2 = scmp.ne.s32.totalorder %s1273_s26, %s1269_s25 }
  0x19   : > { %1810 = sst [smem:[#allocation21_spill]] %s1281_s28  ;;  %s1892_s30 = smov (%p39_p0, %s37_s30), 0 }
  0x1a   : > { %1811 = sst [smem:[#allocation22_spill]] %s1285_s29  ;;  %p92_p3 = scmp.eq.s32.totalorder %s1285_s29, 0 }
  0x1b   : > { %1812 = sst [smem:[#allocation23_spill]] %s1892_s30  ;;  %p74_p4 = scmp.lt.s32.totalorder %s1892_s30, 1 }
  0x1c   : > { %s1216_s6 = scalar_select %p68_p1, %s1281_s28, 0 }
  0x1d   : > { %p1410_p5 = por %p92_p3, %p91_p2  ;;  %p1779_p9 = scmp.lt.s32.totalorder %s1285_s29, 2 }
  0x1e   : > { %s1218_s8 = scalar_select %p68_p1, %s1281_s28, 1 }
  0x1f   : > { %s1219_s9 = scalar_select %p74_p4, %s1892_s30, 0 }
  0x20   : > { %s1220_s10 = scalar_select %p74_p4, %s1892_s30, 1 }
  0x21   : > { %s80_s11 = ssub.s32 %s1216_s6, %s1219_s9  ;;  %s250_s4 = sand.u32 1, %s1285_s29  }
  0x22   : > { %p82_p7 = scmp.eq.s32.totalorder %s80_s11, 0  ;;  %s159_s12 = ssub.s32 %s1218_s8, %s1220_s10 }
  0x23   : > { %p1418_p8 = scmp.eq.s32.totalorder %s159_s12, 0  ;;  %s252_s3 = sand.u32 1, %s1273_s26  }
  0x24   : > { %s1424_s14 = scalar_select %p82_p7, %s1273_s26, %s84_s5  }
  0x25   : > { %s794_s27 = sshll.u32 %s252_s3, 4  ;;  %s796_s2 = sshll.u32 %s1216_s6, 7 }
  0x26   : > { %1815 = sst [smem:[#allocation24_spill]] %s1424_s14  ;;  %s254_s9 = scalar_lea.vmem [#allocation5], %s794_s27 }
  0x27   : > { %s1816_s1 = sld [smem:[#allocation31_spill]]  ;;  %s268_s8 = sshll.u32 %s254_s9, 4  ;;  %s1433_s8 = int_to_ptr.vmem [resolvable:$true] %s268_s8 }
  0x28   : > { %p1439_p10 = pnand %p1779_p9, %p1410_p5  ;;  %s1443_s3 = scalar_lea.sflag [#allocation6], %s250_s4 }
  0x2a   : > { %p1003_p12 = pneg %p1439_p10 }
  0x2d   : > { %s1431_s30 = scalar_lea.hbm %s1816_s1, %s796_s2  ;;  %s1006_s27 = scalar_lea.hbm %s1816_s1, 256 }
  0x2e   : > { %s1001_s6 = scalar_lea.hbm %s1431_s30, 256 }
  0x2f   : > { %p1002_p11 = scmp.ne.s32.totalorder %s1431_s30, %s1001_s6  ;;  %p1008_p1 = scmp.lt.s32.totalorder %s1006_s27, %s1001_s6 }
  0x31   : > { %p1004_p13 = pnand %p1003_p12, %p1002_p11 }
  0x33   : > { %p1005_p0 = pneg %p1004_p13 }
  0x35   : > { %p1010_p2 = pnand %p1008_p1, %p1005_p0 }
  0x37   : > { %1013 = shalt.err (!%p1010_p2)
}
  0x38   : > { %s1014_s28 = scalar_lea.vmem %s1433_s8, 256  ;;  %s1287_s4 = smov [#allocation5]  }
  0x39   : > { %p1015_p4 = scmp.ne.s32.totalorder %s1433_s8, %s1014_s28  ;;  %s1019_s7 = sshll.u32 %s1287_s4, 4  ;;  %s1020_s7 = int_to_ptr.vmem [resolvable:$false] %s1019_s7 }
  0x3a   : > { %s1021_s10 = scalar_lea.vmem %s1020_s7, 512  ;;  %p1022_p11 = scmp.lt.s32.totalorder %s1433_s8, %s1020_s7 }
  0x3b   : > { %p1017_p5 = pnand %p1015_p4, %p1003_p12  ;;  %p1023_p13 = scmp.lt.s32.totalorder %s1021_s10, %s1014_s28 }
  0x3d   : > { %p1018_p7 = pneg %p1017_p5  ;;  %p1024_p6 = por %p1023_p13, %p1022_p11 }
  0x3f   : > { %p1025_p9 = pnand %p1024_p6, %p1018_p7 }
  0x41   : > { %1028 = shalt.err (!%p1025_p9)
}
  0x42   : > { %s1782_s11 = smov 128   ;;  %s1783_s12 = smov 8  }
  0x43   : > { %859 = dma.hbm_to_vmem [thread:$0]  (!%p1439_p10), %s1431_s30, 256, %s1433_s8, %s1443_s3, %s1782_s11, %s1782_s11, %s1783_s12  }
  0x44   : > { %s1464_s9 = sadd.s32 4294967295, %s1285_s29   ;;  %s778_s6 = sadd.s32 4294967294, %s1285_s29  }
  0x45   : > { %p97_p6 = scmp.ne.s32.totalorder %s1269_s25, %s1265_s24  ;;  %p1780_p9 = scmp.eq.s32.totalorder %s1464_s9, 0 }
  0x46   : > { %p133_p12 = scmp.ne.s32.totalorder %s1261_s23, %s1257_s22  ;;  %p139_p0 = scmp.ne.s32.totalorder %s1257_s22, %s1253_s21 }
  0x47   : > { %p1477_p10 = por %p1780_p9, %p97_p6  ;;  %s162_s8 = sadd.s32 1, %s1249_s20 }
  0x48   : > { %p1484_p1 = por %p133_p12, %p92_p3  ;;  %p1490_p2 = por %p139_p0, %p1780_p9 }
  0x49   : > { %s1818_s30 = scalar_select %p1477_p10, 1, 0 }
  0x4a   : > { %s1820_s24 = scalar_select %p1490_p2, 1, 0 }
  0x4b   : > { %s1497_s2 = scalar_select %p1418_p8, %s1249_s20, %s162_s8  }
  0x4c   : > { %p172_p4 = scmp.ne.s32.totalorder %s1249_s20, %s1245_s19  ;;  %p173_p5 = scmp.eq.s32.totalorder %s1464_s9, 1 }
  0x4d   : > { %1821 = sst [smem:[#allocation25_spill]] %s1497_s2  ;;  %p178_p7 = scmp.ne.s32.totalorder %s1245_s19, %s1241_s18 }
  0x4e   : > { %p179_p11 = scmp.eq.s32.totalorder %s778_s6, 1  ;;  %s1822_s21 = sld [smem:[#allocation21_spill]] }
  0x4f   : > { %p1504_p13 = por %p173_p5, %p172_p4  ;;  %s1827_s13 = sld [smem:[#allocation23_spill]] }
  0x50   : > { %p1509_p3 = por %p179_p11, %p178_p7  ;;  %p210_p8 = scmp.ne.s32.totalorder %s1237_s17, %s1233_s16 }
  0x51   : > { %s1823_s27 = scalar_select %p1504_p13, 1, 0 }
  0x52   : > { %s1825_s4 = scalar_select %p1509_p3, 1, 0 }
  0x53   : > { %1824 = sst [smem:[#allocation26_spill]] %s1823_s27  ;;  %p216_p6 = scmp.ne.s32.totalorder %s1233_s16, %s1229_s15 }
  0x54   : > { %1826 = sst [smem:[#allocation27_spill]] %s1825_s4  ;;  %p791_p12 = scmp.ge.s32.totalorder %s1285_s29, 1 }
  0x55   : > { %p1518_p0 = por %p210_p8, %p173_p5  ;;  %p224_p9 = scmp.lt.s32.totalorder %s1285_s29, 3 }
  0x56   : > { %p1523_p4 = por %p216_p6, %p179_p11  ;;  %s1290_s8 = smov [#allocation2]  }
  0x57   : > { %s1828_s7 = scalar_select %p1518_p0, 1, 0 }
  0x58   : > { %s1830_s10 = scalar_select %p1523_p4, 1, 0 }
  0x59   : > { %1829 = sst [smem:[#allocation28_spill]] %s1828_s7  ;;  %p1527_p13 = pnand %p791_p12, %p224_p9 }
  0x5a   : > { %1831 = sst [smem:[#allocation29_spill]] %s1830_s10  ;;  %s239_s11 = sshll.u32 %s1290_s8, 4  ;;  %s240_s11 = int_to_ptr.vmem [resolvable:$true] %s239_s11 }
  0x5b   : > { %s1832_s6 = scalar_select %p1527_p13, 1, 0 }
  0x5c   : > { %p1833_p7 = scmp.lt.s32.totalorder %s1285_s29, 2  ;;  %p852_p5 = pneg %p1527_p13 }
  0x5d   : > { %p107_p11 = scmp.ge.s32.totalorder %s1822_s21, 1  ;;  %p1835_p8 = scmp.eq.s32.totalorder %s1464_s9, 0 }
  0x5e   : > { %p1535_p3 = pnand %p1833_p7, %p1484_p1  ;;  %s781_s0 = sadd.s32 4294967295, %s1822_s21 }
  0x5f   : > { %p1544_p6 = pnand %p852_p5, %p1835_p8  ;;  %p114_p9 = scmp.ge.s32.totalorder %s1827_s13, 1 }
  0x60   : > { %s1040_s5 = scalar_lea.vmem %s240_s11, 16  ;;  %s1047_s8 = scalar_lea.vmem %s240_s11, 32 }
  0x61   : > { %p1031_p12 = pneg %p1544_p6  ;;  %p1041_p4 = scmp.ne.s32.totalorder %s240_s11, %s1040_s5 }
  0x62   : > { %p1048_p0 = scmp.lt.s32.totalorder %s240_s11, %s240_s11  ;;  %p1049_p2 = scmp.lt.s32.totalorder %s1047_s8, %s1040_s5 }
  0x63   : > { %p1043_p1 = pnand %p1041_p4, %p1031_p12 }
  0x64   : > { %p1050_p10 = por %p1049_p2, %p1048_p0 }
  0x65   : > { %p1044_p7 = pneg %p1043_p1 }
  0x67   : > { %p1051_p13 = pnand %p1050_p10, %p1044_p7 }
  0x69   : > { %1054 = shalt.err (!%p1051_p13)
}
  0x6a   : > { %s1837_s26 = sld [smem:[#allocation30_spill]]  ;;  %s783_s8 = sadd.s32 4294967295, %s1827_s13 }
  0x6b   : > { %s1222_s5 = scalar_select %p107_p11, %s781_s0, 0 }
  0x6c   : > { %s1894_s0 = smov (!%p107_p11, %s781_s0), 1  ;;  %s280_s28 = sand.u32 1, %s1261_s23  }
  0x6d   : > { %s797_s2 = sshll.u32 %s280_s28, 4  ;;  %s800_s1 = sshll.u32 %s1222_s5, 7 }
  0x6e   : > { %s1225_s14 = scalar_select %p114_p9, %s783_s8, 0 }
  0x6f   : > { %s1896_s8 = smov (!%p114_p9, %s783_s8), 1  ;;  %s1840_s18 = sadd.s32 1, %s1261_s23 }
  0x70   : > { %855 = dma.hbm_to_vmem [thread:$0]  (!%p1544_p6), %s1837_s26, 16, %s240_s11, [#allocation3]  }
  0x71   : > { %s122_s20 = ssub.s32 %s1222_s5, %s1225_s14  ;;  %s197_s10 = ssub.s32 %s1894_s0, %s1896_s8 }
  0x72   : > { %p124_p10 = scmp.eq.s32.totalorder %s122_s20, 0  ;;  %p198_p2 = scmp.eq.s32.totalorder %s197_s10, 0 }
  0x73   : > { %s1838_s26 = sld [smem:[#allocation32_spill]]  ;;  %s1841_s28 = sadd.s32 1, %s1237_s17 }
  0x74   : > { %s1575_s21 = scalar_select %p124_p10, %s1261_s23, %s1840_s18  }
  0x75   : > { %s1580_s7 = scalar_select %p198_p2, %s1237_s17, %s1841_s28  }
  0x76   : > { %s282_s13 = scalar_lea.vmem [#allocation7], %s797_s2  ;;  %p1057_p0 = pneg %p1535_p3 }
  0x77   : > { %s297_s27 = sshll.u32 %s282_s13, 4  ;;  %s298_s27 = int_to_ptr.vmem [resolvable:$true] %s297_s27 }
  0x79   : > { %s1839_s11 = smov %s1838_s26  ;;  %s1570_s4 = scalar_lea.hbm %s1838_s26, %s800_s1 }
  0x7a   : > { %s1055_s20 = scalar_lea.hbm %s1570_s4, 256  ;;  %p1061_p11 = scmp.lt.s32.totalorder %s1570_s4, %s1839_s11 }
  0x7b   : > { %p1056_p13 = scmp.ne.s32.totalorder %s1570_s4, %s1055_s20 }
  0x7d   : > { %p1058_p4 = pnand %p1057_p0, %p1056_p13 }
  0x7f   : > { %p1059_p5 = pneg %p1058_p4 }
  0x81   : > { %p1064_p8 = pnand %p1061_p11, %p1059_p5 }
  0x83   : > { %1067 = shalt.err (!%p1064_p8)
}
  0x84   : > { %s1068_s18 = scalar_lea.vmem %s298_s27, 256  ;;  %s1291_s0 = smov [#allocation7]  }
  0x85   : > { %p1069_p6 = scmp.ne.s32.totalorder %s298_s27, %s1068_s18  ;;  %s1073_s2 = sshll.u32 %s1291_s0, 4  ;;  %s1074_s2 = int_to_ptr.vmem [resolvable:$false] %s1073_s2 }
  0x86   : > { %s1075_s10 = scalar_lea.vmem %s1074_s2, 512  ;;  %p1076_p1 = scmp.lt.s32.totalorder %s298_s27, %s1074_s2 }
  0x87   : > { %p1071_p9 = pnand %p1069_p6, %p1057_p0  ;;  %p1077_p7 = scmp.lt.s32.totalorder %s1075_s10, %s1068_s18 }
  0x89   : > { %p1072_p12 = pneg %p1071_p9  ;;  %p1078_p10 = por %p1077_p7, %p1076_p1 }
  0x8b   : > { %p1079_p2 = pnand %p1078_p10, %p1072_p12 }
  0x8d   : > { %1082 = shalt.err (!%p1079_p2)
}
  0x8e   : > { %s1842_s5 = smov 8   ;;  %s1843_s8 = smov 128  }
  0x8f   : > { %862 = dma.hbm_to_vmem [thread:$0]  (!%p1535_p3), %s1570_s4, 256, %s298_s27, %s1443_s3, %s1843_s8, %s1843_s8, %s1842_s5  }
  0x90   : > { %p1844_p13 = scmp.ne.s32.totalorder %s1832_s6, 0 }
  0x91   : > { %p1845_p0 = scmp.eq.s32.totalorder (!%p1844_p13), %s1464_s9, 0 }
  0x92   : > { %309 = sbr.rel (%p1844_p13) target bundleno = 649 (0x289), region = 32 }
  0x97   : > { %1196 = dma.done.wait (%p1845_p0), [#allocation3], 16   ;;  %p1846_p4 = pmov %p1845_p0 }
  0x98   : > { %s315_s1 = sand.u32 1, %s1464_s9   ;;  %s317_s12 = sand.u32 1, %s1269_s25  }
  0x99   : > { %1198 = vsyncadd (%p1846_p4), [#allocation3], 4294967280  ;;  %s803_s14 = sshll.u32 %s317_s12, 4  ;;  %s316_s26 = scalar_lea.sflag [#allocation6], %s315_s1 }
  0x9a   : > { %s319_s28 = scalar_lea.vmem [#allocation5], %s803_s14  ;;  %p1847_p5 = scmp.ne.s32.totalorder %s1818_s30, 0 }
  0x9c   : > { %1200 = dma.done.wait (%p1847_p5), %s316_s26, 256  }
  0x9d   : > { %1202 = vsyncadd (%p1847_p5), %s316_s26, 4294967040  ;;  %s326_s3 = sand.u32 1, %s1257_s22   ;;  %p1848_p3 = scmp.ne.s32.totalorder %s1820_s24, 0 }
  0x9e   : > { %s1610_s27 = sshll.u32 %s326_s3, 4 }
  0x9f   : > { %s328_s4 = scalar_lea.vmem [#allocation7], %s1610_s27 }
  0xa0   : > { %1204 = dma.done.wait (%p1848_p3), %s316_s26, 256  }
  0xa1   : > { %1206 = vsyncadd (%p1848_p3), %s316_s26, 4294967040  ;;  %s1849_s9 = sld [smem:[#allocation20_spill]]  ;;  %s353_s30 = sand.u32 1, %s1245_s19   ;;  %v390_v0 = vlaneseq  ;;  %v389_v2 = vld [vmem:[#allocation2] sm:$0x1] }
  0xa2   : > { %s360_s6 = sand.u32 1, %s1233_s16   ;;  %s805_s13 = sshll.u32 %s353_s30, 1 }
  0xa3   : > { %s806_s20 = sshll.u32 %s360_s6, 1  ;;  %v391_v1 = vshrl.u32 %v390_v0, 7  ;;  %s1629_s24 = scalar_lea.vmem [#allocation8], %s805_s13 }
  0xa4   : > { %s1631_s29 = scalar_lea.vmem [#allocation9], %s806_s20 }
  0xa7   : > { %p392_p11 = scmp.ge.s32.totalorder %s1849_s9, 0  ;;  %p393_p8 = scmp.lt.s32.totalorder %s1849_s9, 1 }
  0xa9   : > { %p1625_p6 = pnand %p393_p8, %p392_p11 }
  0xab   : > { %397 = sbr.rel (%p1625_p6) target bundleno = 378 (0x17a), region = 48 }
  0xb0   : > { %v399_v3 = vld [vmem:[%s319_s28 + $0x8] sm:$0xff]  ;;  %v402_v4 = vsub.s32 0, %v391_v1  ;;  %v1292_v5 = vmov 0.0   ;;  %v398_v6 = vld [vmem:[%s319_s28] sm:$0xff]  ;;  %vm1293_vm0 = vmmov 0   ;;  %vm413_vm1 = vcmask 130048  }
  0xb1   : > { %826 = vmatprep.subr.mxu0 %v1292_v5  ;;  %411 = vst [vmem:[%s1629_s24] sm:$0x3] %v1292_v5  ;;  %830 = vmatprep.mubr.msk.f32.mxu0 %vm1293_vm0, %v1292_v5 }
  0xb2   : > { %827 = vmatpush3.msra.mxu0 %v399_v3  ;;  %v403_v7 = vrot.slane %v389_v2, %v402_v4 }
  0xb3   : > { %828 = vmatprep.subr.mxu0 %v1292_v5 }
  0xb4   : > { %829 = vmatpush3.msra.mxu0 %v398_v6  ;;  %vm404_vm2 = vcmp.eq.s32.totalorder %v403_v7, %v391_v1 }
  0xb5   : > { %v807_v8 = vsel %vm404_vm2, 1.0, %v1292_v5 }
  0xb6   : > { %831 = vmatmul.mubr.msk.f32.vlgmr.msra.gmra.mxu0 %vm413_vm1, %v807_v8 }
  0xb8   : > { %v412_v9 = vld [vmem:[%s1629_s24] sm:$0x3] }
 0x176   : > { %v483_v10 = vpop.f32.mrf.mxu0 }
 0x177   : > { %v487_v11 = vadd.f32 %v483_v10, %v412_v9 }
 0x178   : > { %v832_v12 = vpop.f32.mrf.mxu0 }
 0x179   : > { %488 = vst [vmem:[%s1629_s24] sm:$0x3] %v487_v11 }
 0x17a PF: > { %s1851_s18 = sld [smem:[#allocation20_spill]] }
 0x180   : > { %p489_p9 = scmp.ge.s32.totalorder %s1851_s18, 1  ;;  %p490_p12 = scmp.lt.s32.totalorder %s1851_s18, 2 }
 0x182   : > { %p1640_p1 = pnand %p490_p12, %p489_p9 }
 0x184   : > { %494 = sbr.rel (%p1640_p1) target bundleno = 595 (0x253), region = 56 }
 0x189   : > { %v496_v13 = vld [vmem:[%s328_s4 + $0x8] sm:$0xff]  ;;  %v499_v14 = vsub.s32 0, %v391_v1  ;;  %v1294_v15 = vmov 0.0   ;;  %v495_v16 = vld [vmem:[%s328_s4] sm:$0xff]  ;;  %vm1295_vm3 = vmmov 0   ;;  %vm510_vm4 = vcmask 130048  }
 0x18a   : > { %833 = vmatprep.subr.mxu0 %v1294_v15  ;;  %508 = vst [vmem:[%s1631_s29] sm:$0x3] %v1294_v15  ;;  %837 = vmatprep.mubr.msk.f32.mxu0 %vm1295_vm3, %v1294_v15 }
 0x18b   : > { %834 = vmatpush3.msra.mxu0 %v496_v13  ;;  %v500_v17 = vrot.slane %v389_v2, %v499_v14 }
 0x18c   : > { %835 = vmatprep.subr.mxu0 %v1294_v15 }
 0x18d   : > { %836 = vmatpush3.msra.mxu0 %v495_v16  ;;  %vm501_vm5 = vcmp.eq.s32.totalorder %v500_v17, %v391_v1 }
 0x18e   : > { %v809_v18 = vsel %vm501_vm5, 1.0, %v1294_v15 }
 0x18f   : > { %838 = vmatmul.mubr.msk.f32.vlgmr.msra.gmra.mxu0 %vm510_vm4, %v809_v18 }
 0x191   : > { %v509_v19 = vld [vmem:[%s1631_s29] sm:$0x3] }
 0x24f   : > { %v580_v20 = vpop.f32.mrf.mxu0 }
 0x250   : > { %v584_v21 = vadd.f32 %v580_v20, %v509_v19 }
 0x251   : > { %v839_v22 = vpop.f32.mrf.mxu0 }
 0x252   : > { %585 = vst [vmem:[%s1631_s29] sm:$0x3] %v584_v21 }
 0x253 PF: > { %s1853_s2 = sld [smem:[#allocation20_spill]]  ;;  %s610_s5 = sshll.u32 %s1629_s24, 4  ;;  %s1657_s5 = int_to_ptr.vmem [resolvable:$true] %s610_s5 }
 0x254   : > { %s1854_s10 = sld [smem:[#allocation26_spill]]  ;;  %s629_s4 = sshll.u32 %s1631_s29, 4  ;;  %s630_s4 = int_to_ptr.vmem [resolvable:$true] %s629_s4 }
 0x255   : > { %s1855_s28 = sld [smem:[#allocation33_spill]]  ;;  %s587_s9 = scalar_lea.sflag [#allocation4], %s353_s30 }
 0x256   : > { %s1083_s13 = scalar_lea.vmem %s1657_s5, 32  ;;  %s1296_s20 = smov [#allocation8]  }
 0x257   : > { %p1084_p7 = scmp.ne.s32.totalorder %s1657_s5, %s1083_s13  ;;  %s1087_s15 = sshll.u32 %s1296_s20, 4  ;;  %s1088_s15 = int_to_ptr.vmem [resolvable:$false] %s1087_s15 }
 0x258   : > { %s1089_s24 = scalar_lea.vmem %s1088_s15, 64  ;;  %p1090_p0 = scmp.lt.s32.totalorder %s1657_s5, %s1088_s15 }
 0x259   : > { %s813_s8 = scalar_select %p1625_p6, 1, %s1853_s2 }
 0x25a   : > { %s815_s12 = sadd.s32 4294967295, %s1853_s2  ;;  %p1857_p10 = scmp.ne.s32.totalorder %s1854_s10, 0 }
 0x25b   : > { %s814_s1 = sshll.u32 %s813_s8, 5  ;;  %s1856_s3 = smov %s1855_s28 }
 0x25c   : > { %s608_s27 = scalar_lea.hbm %s1855_s28, %s814_s1  ;;  %p1085_p2 = pnand %p1084_p7, %p1857_p10 }
 0x25d   : > { %p1091_p4 = scmp.lt.s32.totalorder %s1089_s24, %s1083_s13 }
 0x25e   : > { %p1086_p13 = pneg %p1085_p2 }
 0x25f   : > { %p1092_p5 = por %p1091_p4, %p1090_p0 }
 0x261   : > { %p1093_p3 = pnand %p1092_p5, %p1086_p13 }
 0x263   : > { %1096 = shalt.err (!%p1093_p3)
}
 0x264   : > { %s1097_s18 = scalar_lea.hbm %s608_s27, 32  ;;  %s1101_s8 = scalar_lea.hbm %s1856_s3, 64 }
 0x265   : > { %p1098_p11 = scmp.ne.s32.totalorder %s608_s27, %s1097_s18  ;;  %p1102_p9 = scmp.lt.s32.totalorder %s608_s27, %s1856_s3 }
 0x266   : > { %p1103_p12 = scmp.lt.s32.totalorder %s1101_s8, %s1097_s18 }
 0x267   : > { %p1099_p8 = pnand %p1098_p11, %p1857_p10 }
 0x268   : > { %p1104_p7 = por %p1103_p12, %p1102_p9 }
 0x269   : > { %p1100_p6 = pneg %p1099_p8 }
 0x26b   : > { %p1105_p2 = pnand %p1104_p7, %p1100_p6 }
 0x26d   : > { %1108 = shalt.err (!%p1105_p2)
}
 0x26e   : > { %s1858_s26 = sld [smem:[#allocation28_spill]]  ;;  %s1898_s12 = smov (%p1640_p1, %s815_s12), 1 }
 0x26f   : > { %848 = dma.vmem_to_hbm [thread:$0]  (%p1857_p10), %s1657_s5, 32, %s608_s27, %s587_s9  }
 0x270   : > { %s817_s28 = sshll.u32 %s1898_s12, 5  ;;  %s1859_s15 = sld [smem:[#allocation34_spill]] }
 0x271   : > { %s592_s18 = scalar_lea.sflag [#allocation10], %s360_s6  ;;  %s1109_s29 = scalar_lea.vmem %s630_s4, 32 }
 0x272   : > { %p1110_p13 = scmp.ne.s32.totalorder %s630_s4, %s1109_s29  ;;  %s1297_s10 = smov [#allocation9]  }
 0x273   : > { %s1113_s8 = sshll.u32 %s1297_s10, 4  ;;  %s1114_s8 = int_to_ptr.vmem [resolvable:$false] %s1113_s8 }
 0x274   : > { %p1861_p0 = scmp.ne.s32.totalorder %s1858_s26, 0  ;;  %s1115_s5 = scalar_lea.vmem %s1114_s8, 64 }
 0x275   : > { %p1116_p10 = scmp.lt.s32.totalorder %s630_s4, %s1114_s8  ;;  %p1117_p3 = scmp.lt.s32.totalorder %s1115_s5, %s1109_s29 }
 0x276   : > { %s1860_s30 = smov %s1859_s15  ;;  %s627_s24 = scalar_lea.hbm %s1859_s15, %s817_s28 }
 0x277   : > { %p1111_p4 = pnand %p1110_p13, %p1861_p0  ;;  %p1118_p1 = por %p1117_p3, %p1116_p10 }
 0x279   : > { %p1112_p5 = pneg %p1111_p4 }
 0x27b   : > { %p1119_p11 = pnand %p1118_p1, %p1112_p5 }
 0x27d   : > { %1122 = shalt.err (!%p1119_p11)
}
 0x27e   : > { %s1123_s0 = scalar_lea.hbm %s627_s24, 32  ;;  %s1127_s12 = scalar_lea.hbm %s1860_s30, 64 }
 0x27f   : > { %p1124_p8 = scmp.ne.s32.totalorder %s627_s24, %s1123_s0  ;;  %p1128_p12 = scmp.lt.s32.totalorder %s627_s24, %s1860_s30 }
 0x280   : > { %p1129_p7 = scmp.lt.s32.totalorder %s1127_s12, %s1123_s0 }
 0x281   : > { %p1125_p6 = pnand %p1124_p8, %p1861_p0 }
 0x282   : > { %p1130_p2 = por %p1129_p7, %p1128_p12 }
 0x283   : > { %p1126_p9 = pneg %p1125_p6 }
 0x285   : > { %p1131_p13 = pnand %p1130_p2, %p1126_p9 }
 0x287   : > { %1134 = shalt.err (!%p1131_p13)
}
 0x288   : > { %849 = dma.vmem_to_hbm [thread:$0]  (%p1861_p0), %s630_s4, 32, %s627_s24, %s592_s18  }
 0x289 PF: > { %s1862_s1 = sld [smem:[#allocation17_spill]] }
 0x28a   : > { %s1863_s14 = sld [smem:[#allocation27_spill]] }
 0x28b   : > { %s1864_s28 = sld [smem:[#allocation22_spill]] }
 0x28f   : > { %s641_s13 = sand.u32 1, %s1862_s1  }
 0x290   : > { %p1865_p4 = scmp.ne.s32.totalorder %s1863_s14, 0  ;;  %s642_s20 = scalar_lea.sflag [#allocation4], %s641_s13 }
 0x291   : > { %p1866_p5 = scmp.ge.s32.totalorder %s1864_s28, 2 }
 0x293   : > { %p864_p10 = pnand %p1866_p5, %p1865_p4 }
 0x295   : > { %p865_p3 = pneg %p864_p10 }
 0x297   : > { %1208 = dma.done.wait (%p865_p3), %s642_s20, 32  }
 0x298   : > { %1210 = vsyncadd (%p865_p3), %s642_s20, 4294967264  ;;  %s1867_s15 = sld [smem:[#allocation16_spill]]  ;;  %p1870_p11 = pmov %p1866_p5 }
 0x299   : > { %s1868_s29 = sld [smem:[#allocation29_spill]] }
 0x29e   : > { %s650_s10 = sand.u32 1, %s1867_s15  }
 0x29f   : > { %p1869_p1 = scmp.ne.s32.totalorder %s1868_s29, 0  ;;  %s651_s4 = scalar_lea.sflag [#allocation10], %s650_s10 }
 0x2a1   : > { %p867_p8 = pnand %p1870_p11, %p1869_p1 }
 0x2a3   : > { %p868_p0 = pneg %p867_p8 }
 0x2a5   : > { %1212 = dma.done.wait (%p868_p0), %s651_s4, 32  }
 0x2a6   : > { %1214 = vsyncadd (%p868_p0), %s651_s4, 4294967264  ;;  %s25_s29 = sadd.s32 1, %s1864_s28   ;;  %s1872_s24 = sld [smem:[#allocation18_spill]] }
 0x2a7   : > { %p1714_p6 = scmp.ge.s32.totalorder %s25_s29, 4   ;;  %s1873_s20 = sld [smem:[#allocation25_spill]] }
 0x2a8   : > { %s1874_s8 = smov %s1575_s21  ;;  %s1875_s5 = sld [smem:[#allocation19_spill]] }
 0x2a9   : > { %s1876_s0 = sld [smem:[#allocation24_spill]]  ;;  %s1880_s15 = smov %s1233_s16 }
 0x2aa   : > { %s1877_s27 = sld [smem:[#allocation21_spill]]  ;;  %s1881_s16 = smov %s1237_s17 }
 0x2ab   : > { %s1878_s28 = sld [smem:[#allocation23_spill]]  ;;  %s1882_s17 = smov %s1580_s7 }
 0x2ac   : > { %s1883_s18 = smov %s1245_s19  ;;  %s1884_s19 = smov %s1872_s24 }
 0x2ad   : > { %s1885_s21 = smov %s1257_s22  ;;  %s1886_s22 = smov %s1261_s23 }
 0x2ae   : > { %s1887_s23 = smov %s1874_s8  ;;  %s1888_s24 = smov %s1269_s25 }
 0x2af   : > { %s1889_s25 = smov %s1875_s5  ;;  %s1890_s26 = smov %s1876_s0 }
 0x2b0   :  { %24 = sbr.rel (!%p1714_p6) target bundleno = 20 (0x14), region = 127 }
 0x2b5   :  { %656 = vsyncpa [#allocation3], 1 }
 0x2b6   :  { %658 = vsyncpa [#allocation3 + $0x1], 1 }
 0x2b7   :  { %659 = vsyncpa [#allocation6], 1 }
 0x2b8   :  { %661 = vsyncpa [#allocation6 + $0x1], 1 }
 0x2b9   :  { %662 = vsyncpa [#allocation4], 1 }
 0x2ba   :  { %664 = vsyncpa [#allocation4 + $0x1], 1 }
 0x2bb   :  { %665 = vsyncpa [#allocation10], 1 }
 0x2bc   :  { %667 = vsyncpa [#allocation10 + $0x1], 1 }

</bundles_post_ra>
